<compile_context>
chip_gen: v7x
topology: tpu7x:2x2x1
jax: 0.10.0
libtpu: 0.0.40
codegen_flags: <defaults>
</compile_context>

<pallas_src>
import jax
import jax.numpy as jnp
from jax.experimental import pallas as pl
from jax.experimental.pallas import tpu as pltpu


def _round_up(x, m):
    return ((x + m - 1) // m) * m


def _adv_net_kernel(x_ref, w1_ref, b1_ref, w2_ref, b2_ref, w3_ref, b3_ref,
                    y_ref, acc_ref):
    """One (batch-tile, K-tile) grid step of the CDAN adversarial head."""
    k = pl.program_id(1)

    @pl.when(k == 0)
    def _init():
        acc_ref[...] = jnp.zeros_like(acc_ref)

    # Layer-1 partial product on the MXU.  x arrives as f32 and is cast to the
    # matmul dtype here (the cast hides under the W1 tile DMA); accumulation is
    # always f32.
    acc_ref[...] += jnp.dot(x_ref[...].astype(w1_ref.dtype), w1_ref[...],
                            preferred_element_type=jnp.float32)

    @pl.when(k == pl.num_programs(1) - 1)
    def _finalize():
        # Bias + ReLU once, after the K reduction completes.
        h1 = jnp.maximum(acc_ref[...] + b1_ref[...], 0.0)
        # Layer 2: hidden x hidden, weights resident in VMEM (single-buffered).
        h2 = jnp.dot(h1.astype(w2_ref.dtype), w2_ref[...],
                     preferred_element_type=jnp.float32)
        h2 = jnp.maximum(h2 + b2_ref[...], 0.0)
        # Layer 3 (single output column): VPU multiply + XLU cross-lane reduce
        # instead of an N=1 MXU matmul.  w3 stays f32 end-to-end.
        logits = jnp.sum(h2 * w3_ref[...], axis=-1, keepdims=True) + b3_ref[0, 0]
        # Exact sigmoid: the divide is on a (bm, 1) value, so it is free.
        y_ref[...] = (1.0 / (1.0 + jnp.exp(-logits))).astype(y_ref.dtype)
    # TODO(synk): Dropout(p=0.5) and the gradient-reversal hook (grl_hook /
    # calc_coeff) are training-time / backward-pass behaviors; the inference
    # forward implemented here treats them as identities.


def adversarial_network_forward(x, w1, b1, w2, b2, w3, b3, *,
                                batch_tile=512, k_tile=1024,
                                use_bf16_matmul=True,
                                max_resident_w1_bytes=8 * 1024 * 1024):
    """Fused CDAN AdversarialNetwork forward.  Weights stored (in, out)."""
    B, K = x.shape
    K_w, H = w1.shape
    assert K_w == K, "w1 must be (in_feature, hidden): kernel computes x @ W"
    assert w2.shape == (H, H) and w3.shape == (H, 1)
    assert batch_tile % 8 == 0 and k_tile % 128 == 0

    mx_dtype = jnp.bfloat16 if use_bf16_matmul else jnp.float32
    w_itemsize = jnp.dtype(mx_dtype).itemsize

    # ---- tile selection ----------------------------------------------------
    # Batch tile: cap at the (8-aligned) batch so tiny batches don't pad to 512.
    # (On v7x with small serving batches, pass batch_tile = B_pad // 2 so the
    # "parallel" axis has >= 2 tiles and both TensorCores are used.)
    bm = min(batch_tile, _round_up(B, 8))
    B_pad = _round_up(B, bm)

    H_pad = _round_up(H, 128)
    K_128 = _round_up(K, 128)
    # Keep W1 fully resident (single K step, no per-batch-tile re-streaming)
    # whenever it fits the budget; otherwise stream it along a K grid axis.
    if K_128 * H_pad * w_itemsize <= max_resident_w1_bytes:
        bk = K_128
    else:
        bk = min(k_tile, K_128)
    K_pad = _round_up(K, bk)
    grid = (B_pad // bm, K_pad // bk)
    grid_k = grid[1]

    # ---- operand prep ------------------------------------------------------
    # x stays f32 (cast to bf16 inside the kernel); only pad if needed.
    if B_pad == B and K_pad == K:
        xp = jnp.asarray(x, jnp.float32)
    else:
        xp = jnp.zeros((B_pad, K_pad), jnp.float32).at[:B, :K].set(
            jnp.asarray(x, jnp.float32))
    # (Production note: pad/cast weights once outside the serving loop; done
    # here inline so the script is self-contained.)
    w1p = jnp.zeros((K_pad, H_pad), mx_dtype).at[:K, :H].set(w1.astype(mx_dtype))
    w2p = jnp.zeros((H_pad, H_pad), mx_dtype).at[:H, :H].set(w2.astype(mx_dtype))
    w3p = jnp.zeros((1, H_pad), jnp.float32).at[:, :H].set(
        jnp.asarray(w3, jnp.float32).reshape(1, H))
    b1p = jnp.zeros((1, H_pad), jnp.float32).at[:, :H].set(
        jnp.asarray(b1, jnp.float32).reshape(1, H))
    b2p = jnp.zeros((1, H_pad), jnp.float32).at[:, :H].set(
        jnp.asarray(b2, jnp.float32).reshape(1, H))
    b3p = jnp.asarray(b3, jnp.float32).reshape(1, 1)

    # ---- buffering & VMEM budget -------------------------------------------
    w1_mode = pl.Buffered(1) if grid_k == 1 else pl.Buffered(2)
    resident = pl.Buffered(1)   # constant-index operands: no double-buffering
    vmem_est = (
        2 * bm * bk * 4                                  # x tiles (f32, 2 bufs)
        + (1 if grid_k == 1 else 2) * bk * H_pad * w_itemsize   # W1
        + H_pad * H_pad * w_itemsize                      # W2 (single buffer)
        + 3 * H_pad * 4                                   # b1, b2, w3 rows
        + bm * H_pad * 4                                  # f32 accumulator
        + 2 * bm * 128 * 4                                # output tile (lane-padded)
    )
    vmem_limit = max(32 * 1024 * 1024, int(1.25 * vmem_est))

    out = pl.pallas_call(
        _adv_net_kernel,
        out_shape=jax.ShapeDtypeStruct((B_pad, 1), jnp.float32),
        grid_spec=pltpu.PrefetchScalarGridSpec(
            num_scalar_prefetch=0,
            grid=grid,
            in_specs=[
                # streamed tiles (double-buffered by the pipeline)
                pl.BlockSpec((bm, bk), lambda i, k: (i, k)),            # x (f32)
                pl.BlockSpec((bk, H_pad), lambda i, k: (k, 0),
                             pipeline_mode=w1_mode),                    # W1
                # resident operands (constant index -> DMA'd once, 1 buffer)
                pl.BlockSpec((1, H_pad), lambda i, k: (0, 0),
                             pipeline_mode=resident),                   # b1
                pl.BlockSpec((H_pad, H_pad), lambda i, k: (0, 0),
                             pipeline_mode=resident),                   # W2
                pl.BlockSpec((1, H_pad), lambda i, k: (0, 0),
                             pipeline_mode=resident),                   # b2
                pl.BlockSpec((1, H_pad), lambda i, k: (0, 0),
                             pipeline_mode=resident),                   # w3 row (f32)
                pl.BlockSpec(memory_space=pltpu.MemorySpace.SMEM),      # b3 scalar
            ],
            out_specs=pl.BlockSpec((bm, 1), lambda i, k: (i, 0)),
            scratch_shapes=[pltpu.VMEM((bm, H_pad), jnp.float32)],      # layer-1 acc
        ),
        compiler_params=pltpu.CompilerParams(
            dimension_semantics=("parallel", "arbitrary"),
            vmem_limit_bytes=vmem_limit,
        ),
    )(xp, w1p, b1p, w2p, b2p, w3p, b3p)
    return out[:B]


def init_params(key, in_feature, hidden_size):
    """Xavier-normal weights, zero biases (matches init_weights for Linear)."""
    k1, k2, k3 = jax.random.split(key, 3)

    def xavier_normal(k, fan_in, fan_out):
        std = jnp.sqrt(2.0 / (fan_in + fan_out))
        return std * jax.random.normal(k, (fan_in, fan_out), dtype=jnp.float32)

    w1 = xavier_normal(k1, in_feature, hidden_size)
    b1 = jnp.zeros((1, hidden_size), dtype=jnp.float32)
    w2 = xavier_normal(k2, hidden_size, hidden_size)
    b2 = jnp.zeros((1, hidden_size), dtype=jnp.float32)
    w3 = xavier_normal(k3, hidden_size, 1)
    b3 = jnp.zeros((1, 1), dtype=jnp.float32)
    return w1, b1, w2, b2, w3, b3


def reference_forward_f32(x, w1, b1, w2, b2, w3, b3):
    h1 = jnp.maximum(x @ w1 + b1, 0.0)
    h2 = jnp.maximum(h1 @ w2 + b2, 0.0)
    return jax.nn.sigmoid(h2 @ w3 + b3)


def reference_forward_matched(x, w1, b1, w2, b2, w3, b3, use_bf16=True):
    """Reference with the same bf16-matmul / f32-accumulate / f32-w3 contract."""
    dt = jnp.bfloat16 if use_bf16 else jnp.float32
    h1 = jnp.dot(x.astype(dt), w1.astype(dt), preferred_element_type=jnp.float32)
    h1 = jnp.maximum(h1 + b1.reshape(1, -1), 0.0)
    h2 = jnp.dot(h1.astype(dt), w2.astype(dt), preferred_element_type=jnp.float32)
    h2 = jnp.maximum(h2 + b2.reshape(1, -1), 0.0)
    logits = jnp.sum(h2 * jnp.asarray(w3, jnp.float32).reshape(1, -1),
                     axis=-1, keepdims=True) + jnp.asarray(b3, jnp.float32).reshape(1, 1)
    return jax.nn.sigmoid(logits)


if __name__ == "__main__":
    # Small shapes consistent with the module.
    B, IN_FEATURE, HIDDEN = 8, 256, 32

    key = jax.random.PRNGKey(0)
    kx, kp = jax.random.split(key)
    x = jax.random.normal(kx, (B, IN_FEATURE), dtype=jnp.float32)
    params = init_params(kp, IN_FEATURE, HIDDEN)

    # (1) Streamed-W1 path: residency disabled + k_tile=128 forces two K tiles,
    #     exercising the accumulator init / accumulate / finalize structure.
    y_stream = adversarial_network_forward(
        x, *params, batch_tile=128, k_tile=128, max_resident_w1_bytes=0)
    # (2) Resident-W1 path (production default for modest in_feature).
    y_res = adversarial_network_forward(x, *params)
    jax.block_until_ready((y_stream, y_res))
    assert y_stream.shape == (B, 1) and y_res.shape == (B, 1)

    assert jnp.allclose(y_stream, y_res, atol=2e-3, rtol=2e-3), (
        "streamed vs resident mismatch: "
        f"{float(jnp.max(jnp.abs(y_stream - y_res)))}")

    y_matched = reference_forward_matched(x, *params, use_bf16=True)
    for name, y in (("streamed", y_stream), ("resident", y_res)):
        assert jnp.allclose(y, y_matched, atol=2e-3, rtol=2e-3), (
            f"{name} mismatch vs bf16-matched reference: "
            f"{float(jnp.max(jnp.abs(y - y_matched)))}")

    y_f32 = reference_forward_f32(x, *params)
    assert jnp.allclose(y_res, y_f32, atol=5e-2), (
        "mismatch vs f32 reference: "
        f"{float(jnp.max(jnp.abs(y_res - y_f32)))}")

    print("KERNEL_OK")
</pallas_src>

<mosaic_0001>
module attributes {stable_mosaic.version = 11 : i64} {
  func.func @_adv_net_kernel(%arg0: i32, %arg1: i32, %arg2: memref<8x128xf32, #tpu.memory_space<vmem>>, %arg3: memref<128x128xbf16, #tpu.memory_space<vmem>>, %arg4: memref<1x128xf32, #tpu.memory_space<vmem>>, %arg5: memref<128x128xbf16, #tpu.memory_space<vmem>>, %arg6: memref<1x128xf32, #tpu.memory_space<vmem>>, %arg7: memref<1x128xf32, #tpu.memory_space<vmem>>, %arg8: memref<1x1xf32, #tpu.memory_space<smem>>, %arg9: memref<8x1xf32, #tpu.memory_space<vmem>>, %arg10: memref<8x128xf32, #tpu.memory_space<vmem>>) attributes {dimension_semantics = [#tpu.dimension_semantics<parallel>, #tpu.dimension_semantics<arbitrary>], iteration_bounds = array<i64: 1, 2>, scalar_prefetch = 0 : i64, scratch_operands = 1 : i64, tpu.core_type = #tpu.core_type<tc>, window_params = [{transform_indices = @transform_0, window_bounds = array<i64: 8, 128>}, {pipeline_mode = #tpu.pipeline_mode<double_buffered>, transform_indices = @transform_1, window_bounds = array<i64: 128, 128>}, {pipeline_mode = #tpu.pipeline_mode<synchronous>, transform_indices = @transform_2, window_bounds = array<i64: 1, 128>}, {pipeline_mode = #tpu.pipeline_mode<synchronous>, transform_indices = @transform_3, window_bounds = array<i64: 128, 128>}, {pipeline_mode = #tpu.pipeline_mode<synchronous>, transform_indices = @transform_4, window_bounds = array<i64: 1, 128>}, {pipeline_mode = #tpu.pipeline_mode<synchronous>, transform_indices = @transform_5, window_bounds = array<i64: 1, 128>}, {transform_indices = @transform_6, window_bounds = array<i64: 1, 1>}, {transform_indices = @transform_7, window_bounds = array<i64: 8, 1>}]} {
    %c0_i32 = arith.constant 0 : i32
    %0 = arith.cmpi eq, %arg1, %c0_i32 : i32
    %1 = arith.extui %0 : i1 to i32
    %c0_i32_0 = arith.constant 0 : i32
    %2 = arith.cmpi ne, %1, %c0_i32_0 : i32
    scf.if %2 {
      %cst_9 = arith.constant 0.000000e+00 : f32
      %13 = vector.broadcast %cst_9 : f32 to vector<8x128xf32>
      %c0_10 = arith.constant 0 : index
      %c0_11 = arith.constant 0 : index
      %14 = vector.load %arg10[%c0_10, %c0_11] : memref<8x128xf32, #tpu.memory_space<vmem>>, vector<8x128xf32>
      tpu.vector_store %arg10[%c0_10, %c0_11], %13 {strides = array<i32>} : memref<8x128xf32, #tpu.memory_space<vmem>>, vector<8x128xf32>,
    } else {
    }
    %c0 = arith.constant 0 : index
    %c0_1 = arith.constant 0 : index
    %3 = vector.load %arg10[%c0, %c0_1] : memref<8x128xf32, #tpu.memory_space<vmem>>, vector<8x128xf32>
    %c0_2 = arith.constant 0 : index
    %c0_3 = arith.constant 0 : index
    %4 = vector.load %arg2[%c0_2, %c0_3] : memref<8x128xf32, #tpu.memory_space<vmem>>, vector<8x128xf32>
    %5 = arith.truncf %4 : vector<8x128xf32> to vector<8x128xbf16>
    %c0_4 = arith.constant 0 : index
    %c0_5 = arith.constant 0 : index
    %6 = vector.load %arg3[%c0_4, %c0_5] : memref<128x128xbf16, #tpu.memory_space<vmem>>, vector<128x128xbf16>
    %cst = arith.constant dense<0.000000e+00> : vector<8x128xf32>
    %7 = tpu.matmul %5, %6, %cst {dimension_numbers = #tpu.dot_dimension_numbers<[1], [0], [0], [1], [0, 0, 1, 1], [], []>} : vector<8x128xbf16>, vector<128x128xbf16>, vector<8x128xf32> -> vector<8x128xf32>
    %8 = arith.addf %3, %7 : vector<8x128xf32>
    %c0_6 = arith.constant 0 : index
    %c0_7 = arith.constant 0 : index
    %9 = vector.load %arg10[%c0_6, %c0_7] : memref<8x128xf32, #tpu.memory_space<vmem>>, vector<8x128xf32>
    tpu.vector_store %arg10[%c0_6, %c0_7], %8 {strides = array<i32>} : memref<8x128xf32, #tpu.memory_space<vmem>>, vector<8x128xf32>,
    %c1_i32 = arith.constant 1 : i32
    %10 = arith.cmpi eq, %arg1, %c1_i32 : i32
    %11 = arith.extui %10 : i1 to i32
    %c0_i32_8 = arith.constant 0 : i32
    %12 = arith.cmpi ne, %11, %c0_i32_8 : i32
    scf.if %12 {
      %c0_9 = arith.constant 0 : index
      %c0_10 = arith.constant 0 : index
      %13 = vector.load %arg10[%c0_9, %c0_10] : memref<8x128xf32, #tpu.memory_space<vmem>>, vector<8x128xf32>
      %c0_11 = arith.constant 0 : index
      %c0_12 = arith.constant 0 : index
      %14 = vector.load %arg4[%c0_11, %c0_12] : memref<1x128xf32, #tpu.memory_space<vmem>>, vector<1x128xf32>
      %15 = vector.broadcast %14 : vector<1x128xf32> to vector<8x128xf32>
      %16 = arith.addf %13, %15 : vector<8x128xf32>
      %cst_13 = arith.constant 0.000000e+00 : f32
      %17 = vector.broadcast %cst_13 : f32 to vector<8x128xf32>
      %18 = arith.maximumf %16, %17 : vector<8x128xf32>
      %19 = arith.truncf %18 : vector<8x128xf32> to vector<8x128xbf16>
      %c0_14 = arith.constant 0 : index
      %c0_15 = arith.constant 0 : index
      %20 = vector.load %arg5[%c0_14, %c0_15] : memref<128x128xbf16, #tpu.memory_space<vmem>>, vector<128x128xbf16>
      %cst_16 = arith.constant dense<0.000000e+00> : vector<8x128xf32>
      %21 = tpu.matmul %19, %20, %cst_16 {dimension_numbers = #tpu.dot_dimension_numbers<[1], [0], [0], [1], [0, 0, 1, 1], [], []>} : vector<8x128xbf16>, vector<128x128xbf16>, vector<8x128xf32> -> vector<8x128xf32>
      %c0_17 = arith.constant 0 : index
      %c0_18 = arith.constant 0 : index
      %22 = vector.load %arg6[%c0_17, %c0_18] : memref<1x128xf32, #tpu.memory_space<vmem>>, vector<1x128xf32>
      %23 = vector.broadcast %22 : vector<1x128xf32> to vector<8x128xf32>
      %24 = arith.addf %21, %23 : vector<8x128xf32>
      %cst_19 = arith.constant 0.000000e+00 : f32
      %25 = vector.broadcast %cst_19 : f32 to vector<8x128xf32>
      %26 = arith.maximumf %24, %25 : vector<8x128xf32>
      %c0_20 = arith.constant 0 : index
      %c0_21 = arith.constant 0 : index
      %27 = vector.load %arg7[%c0_20, %c0_21] : memref<1x128xf32, #tpu.memory_space<vmem>>, vector<1x128xf32>
      %28 = vector.broadcast %27 : vector<1x128xf32> to vector<8x128xf32>
      %29 = arith.mulf %26, %28 : vector<8x128xf32>
      %cst_22 = arith.constant dense<0.000000e+00> : vector<8xf32>
      %30 = vector.multi_reduction <add>, %29, %cst_22 [1] : vector<8x128xf32> to vector<8xf32>
      %31 = vector.shape_cast %30 : vector<8xf32> to vector<8x1xf32>
      %c0_23 = arith.constant 0 : index
      %c0_24 = arith.constant 0 : index
      %32 = memref.load %arg8[%c0_23, %c0_24] : memref<1x1xf32, #tpu.memory_space<smem>>
      %33 = vector.broadcast %32 : f32 to vector<8x1xf32>
      %34 = arith.addf %31, %33 : vector<8x1xf32>
      %cst_25 = arith.constant 0.000000e+00 : f32
      %35 = vector.broadcast %cst_25 : f32 to vector<8x1xf32>
      %36 = arith.subf %35, %34 : vector<8x1xf32>
      %37 = math.exp %36 : vector<8x1xf32>
      %cst_26 = arith.constant 1.000000e+00 : f32
      %38 = vector.broadcast %cst_26 : f32 to vector<8x1xf32>
      %39 = arith.addf %38, %37 : vector<8x1xf32>
      %cst_27 = arith.constant 1.000000e+00 : f32
      %40 = vector.broadcast %cst_27 : f32 to vector<8x1xf32>
      %41 = arith.divf %40, %39 : vector<8x1xf32>
      %c0_28 = arith.constant 0 : index
      %c0_29 = arith.constant 0 : index
      %42 = vector.load %arg9[%c0_28, %c0_29] : memref<8x1xf32, #tpu.memory_space<vmem>>, vector<8x1xf32>
      tpu.vector_store %arg9[%c0_28, %c0_29], %41 {strides = array<i32>} : memref<8x1xf32, #tpu.memory_space<vmem>>, vector<8x1xf32>,
    } else {
    }
    return
  }
  func.func @transform_0(%arg0: i32, %arg1: i32) -> (i32, i32) {
    %c0_i32 = arith.constant 0 : i32
    return %arg0, %arg1 : i32, i32
  }
  func.func @transform_1(%arg0: i32, %arg1: i32) -> (i32, i32) {
    %c0_i32 = arith.constant 0 : i32
    %c0_i32_0 = arith.constant 0 : i32
    return %arg1, %c0_i32 : i32, i32
  }
  func.func @transform_2(%arg0: i32, %arg1: i32) -> (i32, i32) {
    %c0_i32 = arith.constant 0 : i32
    %c0_i32_0 = arith.constant 0 : i32
    %c0_i32_1 = arith.constant 0 : i32
    return %c0_i32, %c0_i32_0 : i32, i32
  }
  func.func @transform_3(%arg0: i32, %arg1: i32) -> (i32, i32) {
    %c0_i32 = arith.constant 0 : i32
    %c0_i32_0 = arith.constant 0 : i32
    %c0_i32_1 = arith.constant 0 : i32
    return %c0_i32, %c0_i32_0 : i32, i32
  }
  func.func @transform_4(%arg0: i32, %arg1: i32) -> (i32, i32) {
    %c0_i32 = arith.constant 0 : i32
    %c0_i32_0 = arith.constant 0 : i32
    %c0_i32_1 = arith.constant 0 : i32
    return %c0_i32, %c0_i32_0 : i32, i32
  }
  func.func @transform_5(%arg0: i32, %arg1: i32) -> (i32, i32) {
    %c0_i32 = arith.constant 0 : i32
    %c0_i32_0 = arith.constant 0 : i32
    %c0_i32_1 = arith.constant 0 : i32
    return %c0_i32, %c0_i32_0 : i32, i32
  }
  func.func @transform_6(%arg0: i32, %arg1: i32) -> (i32, i32) {
    %c0_i32 = arith.constant 0 : i32
    %c0_i32_0 = arith.constant 0 : i32
    %c0_i32_1 = arith.constant 0 : i32
    return %c0_i32, %c0_i32_0 : i32, i32
  }
  func.func @transform_7(%arg0: i32, %arg1: i32) -> (i32, i32) {
    %c0_i32 = arith.constant 0 : i32
    %c0_i32_0 = arith.constant 0 : i32
    return %arg0, %c0_i32 : i32, i32
  }
}

</mosaic_0001>

<bundles_post_ra>
// kernel: tpu_custom_call.1
= control target key start
LH: loop header
LB: loop body
LE: loop exit
PB: predicated region body
PF: predicated region fallthrough
CT: control target
= control target key end

     0   :  { %s1361_s0 = inlined_call_operand.hbm [shape: f32[8,256], index: 0, kind: input, shape index: {}]   ;;  %s1362_s1 = inlined_call_operand.hbm [shape: bf16[256,128], index: 1, kind: input, shape index: {}]   ;;  %s1363_s2 = inlined_call_operand.vmem [shape: f32[1,128], index: 2, kind: input, shape index: {}]   ;;  %s1364_s3 = inlined_call_operand.hbm [shape: bf16[128,128], index: 3, kind: input, shape index: {}]   ;;  %s1365_s4 = inlined_call_operand.vmem [shape: f32[1,128], index: 4, kind: input, shape index: {}]   ;;  %s1366_s5 = inlined_call_operand.vmem [shape: f32[1,128], index: 5, kind: input, shape index: {}]   ;;  %s1367_s6 = inlined_call_operand.<no memory space> [shape: f32[1,1], index: 6, kind: input, shape index: {}]   ;;  %s1368_s7 = inlined_call_operand.vmem [shape: f32[8,1], index: 7, kind: output, shape index: {}]  }
   0x1   :  { %1376 = sst [smem:[#allocation12_spill]] %s1361_s0 }
   0x2   :  { %12 = sst [smem:[#allocation3]] %s1367_s6 }
   0x3   :  { %13 = vsyncpa [#allocation5], 0 }
   0x4   :  { %15 = vsyncpa [#allocation5 + $0x1], 0 }
   0x5   :  { %16 = vsyncpa [#allocation7], 0 }
   0x6   :  { %18 = vsyncpa [#allocation7 + $0x1], 0  ;;  %s1128_s26 = smov 0   ;;  %s1130_s27 = smov 0  }
   0x7   :  { %s1132_s28 = smov 0   ;;  %s1134_s29 = smov 0  }
   0x8   :  { %s1136_s30 = smov 0   ;;  %s1138_s8 = smov 0  }
   0x9 LB: > { %s1373_s6 = sadd.s32 4294967295, %s1073_s8   ;;  %p58_p0 = scmp.ne.s32.totalorder %s1057_s27, %s1053_s26  ;;  %s1073_s8 = sphi %s1138_s8, %s24_s8   ;;  %s1069_s30 = sphi %s1136_s30, %s1393_s30   ;;  %s1065_s29 = sphi %s1134_s29, %s1392_s29   ;;  %s1061_s28 = sphi %s1132_s28, %s1391_s28   ;;  %s1057_s27 = sphi %s1130_s27, %s1390_s27   ;;  %s1053_s26 = sphi %s1128_s26, %s1389_s26  }
   0xa   : > { %p1160_p1 = scmp.eq.s32.totalorder %s1373_s6, 0  ;;  %p734_p2 = scmp.ge.s32.totalorder %s1073_s8, 1 }
   0xb   : > { %p226_p3 = scmp.lt.s32.totalorder %s1073_s8, 3  ;;  %s1075_s12 = smov [#allocation8]  }
   0xc   : > { %s1377_s9 = scalar_select %p1160_p1, 1, 0 }
   0xd   : > { %p1168_p4 = por %p1160_p1, %p58_p0  ;;  %p1172_p5 = pnand %p734_p2, %p226_p3 }
   0xe   : > { %s241_s13 = sshll.u32 %s1075_s12, 4  ;;  %s33_s15 = sadd.s32 1, %s1069_s30  ;;  %s242_s13 = int_to_ptr.vmem [resolvable:$true] %s241_s13 }
   0xf   : > { %s1378_s10 = scalar_select %p1168_p4, 1, 0 }
  0x10   : > { %s1379_s11 = scalar_select %p1172_p5, 1, 0 }
  0x11   : > { %p837_p6 = pneg %p1172_p5  ;;  %s927_s18 = scalar_lea.hbm %s1364_s3, 1024 }
  0x12   : > { %p928_p8 = scmp.ne.s32.totalorder %s1364_s3, %s927_s18  ;;  %p934_p12 = scmp.lt.u32.totalorder %s927_s18, %s1364_s3 }
  0x13   : > { %p1180_p7 = pnand %p837_p6, %p1160_p1 }
  0x15   : > { %p929_p9 = pneg %p1180_p7 }
  0x17   : > { %p930_p10 = pnand %p929_p9, %p928_p8 }
  0x19   : > { %p931_p11 = pneg %p930_p10 }
  0x1b   : > { %p936_p13 = pnand %p934_p12, %p931_p11 }
  0x1d   : > { %939 = shalt.err (!%p936_p13)
}
  0x1e   : > { %s940_s23 = scalar_lea.vmem %s242_s13, 1024  ;;  %p948_p6 = scmp.lt.s32.totalorder %s242_s13, %s242_s13 }
  0x1f   : > { %p941_p0 = scmp.ne.s32.totalorder %s242_s13, %s940_s23  ;;  %p949_p1 = scmp.lt.s32.totalorder %s940_s23, %s940_s23 }
  0x21   : > { %p943_p2 = pnand %p941_p0, %p929_p9  ;;  %p950_p4 = por %p949_p1, %p948_p6 }
  0x23   : > { %p944_p3 = pneg %p943_p2 }
  0x25   : > { %p951_p5 = pnand %p950_p4, %p944_p3 }
  0x27   : > { %954 = shalt.err (!%p951_p5)
}
  0x28   : > { %s1374_s24 = smov 64   ;;  %s1375_s25 = smov 4  }
  0x29   : > { %840 = dma.hbm_to_vmem [thread:$0]  (!%p1180_p7), %s1364_s3, 1024, %s242_s13, [#allocation7], %s1374_s24, %s1374_s24, %s1375_s25  }
  0x2a   : > { %p34_p1 = scmp.ge.s32.totalorder %s33_s15, 2  ;;  %s45_s16 = sadd.s32 1, %s1061_s28 }
  0x2b   : > { %p52_p4 = scmp.ne.s32.totalorder %s1061_s28, %s1057_s27  ;;  %p53_p5 = scmp.eq.s32.totalorder %s1073_s8, 0 }
  0x2c   : > { %s1395_s15 = smov (%p34_p1, %s33_s15), 0  ;;  %p849_p9 = scmp.lt.s32.totalorder %s1073_s8, 2 }
  0x2d   : > { %p54_p8 = por %p53_p5, %p52_p4  ;;  %s41_s17 = ssub.s32 %s1069_s30, %s1395_s15 }
  0x2e   : > { %s1214_s18 = sand.u32 1, %s1061_s28   ;;  %p43_p10 = scmp.eq.s32.totalorder %s41_s17, 0 }
  0x2f   : > { %s737_s14 = sshll.u32 %s1214_s18, 3  ;;  %s738_s19 = sshll.u32 %s1069_s30, 7 }
  0x30   : > { %s1219_s20 = scalar_select %p43_p10, %s1061_s28, %s45_s16  }
  0x31   : > { %s1381_s0 = sld [smem:[#allocation12_spill]]  ;;  %s268_s23 = scalar_lea.vmem [#allocation4], %s737_s14 }
  0x32   : > { %s277_s26 = sshll.u32 %s268_s23, 4  ;;  %p1226_p7 = pnand %p849_p9, %p54_p8  ;;  %s1230_s26 = int_to_ptr.vmem [resolvable:$true] %s277_s26 }
  0x33   : > { %s739_s16 = sshll.u32 %s1214_s18, 6  ;;  %s265_s17 = scalar_lea.sflag [#allocation5], %s1214_s18 }
  0x34   : > { %p957_p12 = pneg %p1226_p7 }
  0x37   : > { %s1224_s22 = scalar_lea.hbm %s1381_s0, %s738_s19  ;;  %s960_s13 = scalar_lea.hbm %s1381_s0, 256 }
  0x38   : > { %s955_s6 = scalar_lea.hbm %s1224_s22, 128  ;;  %p961_p2 = scmp.lt.u32.totalorder %s1224_s22, %s1381_s0 }
  0x39   : > { %p956_p11 = scmp.ne.s32.totalorder %s1224_s22, %s955_s6  ;;  %p962_p3 = scmp.lt.u32.totalorder %s960_s13, %s955_s6 }
  0x3a   : > { %p964_p1 = scmp.lt.u32.totalorder %s955_s6, %s1224_s22 }
  0x3b   : > { %p958_p13 = pnand %p957_p12, %p956_p11  ;;  %p963_p6 = por %p962_p3, %p961_p2 }
  0x3d   : > { %p959_p0 = pneg %p958_p13  ;;  %p965_p4 = por %p964_p1, %p963_p6 }
  0x3f   : > { %p966_p5 = pnand %p965_p4, %p959_p0 }
  0x41   : > { %969 = shalt.err (!%p966_p5)
}
  0x42   : > { %s970_s24 = scalar_lea.vmem %s1230_s26, 128  ;;  %s1078_s14 = smov [#allocation4]  }
  0x43   : > { %p971_p8 = scmp.ne.s32.totalorder %s1230_s26, %s970_s24  ;;  %s975_s19 = sshll.u32 %s1078_s14, 4  ;;  %s976_s19 = int_to_ptr.vmem [resolvable:$false] %s975_s19 }
  0x44   : > { %s977_s21 = scalar_lea.vmem %s976_s19, 256  ;;  %p978_p11 = scmp.lt.s32.totalorder %s1230_s26, %s976_s19 }
  0x45   : > { %p973_p9 = pnand %p971_p8, %p957_p12  ;;  %p979_p13 = scmp.lt.s32.totalorder %s977_s21, %s970_s24 }
  0x47   : > { %p974_p10 = pneg %p973_p9  ;;  %p980_p2 = por %p979_p13, %p978_p11 }
  0x49   : > { %p981_p3 = pnand %p980_p2, %p974_p10 }
  0x4b   : > { %984 = shalt.err (!%p981_p3)
}
  0x4c   : > { %844 = dma.hbm_to_vmem [thread:$0]  (!%p1226_p7), %s1224_s22, 128, %s1230_s26, %s265_s17  }
  0x4d   : > { %s770_s6 = sshll.u32 %s1069_s30, 10  ;;  %s288_s13 = scalar_lea.vmem [#allocation6], %s739_s16 }
  0x4e   : > { %s295_s23 = sshll.u32 %s288_s13, 4  ;;  %s284_s14 = sand.u32 1, %s1073_s8   ;;  %s1262_s23 = int_to_ptr.vmem [resolvable:$true] %s295_s23 }
  0x4f   : > { %s1268_s21 = scalar_lea.hbm %s1362_s1, %s770_s6  ;;  %s1270_s25 = scalar_lea.sflag [#allocation7], %s284_s14 }
  0x50   : > { %s985_s0 = scalar_lea.hbm %s1268_s21, 1024  ;;  %s990_s26 = scalar_lea.hbm %s1362_s1, 2048 }
  0x51   : > { %p986_p0 = scmp.ne.s32.totalorder %s1268_s21, %s985_s0  ;;  %p991_p4 = scmp.lt.u32.totalorder %s1268_s21, %s1362_s1 }
  0x52   : > { %p992_p5 = scmp.lt.u32.totalorder %s990_s26, %s985_s0  ;;  %p994_p9 = scmp.lt.u32.totalorder %s985_s0, %s1268_s21 }
  0x53   : > { %p988_p6 = pnand %p986_p0, %p957_p12 }
  0x54   : > { %p993_p8 = por %p992_p5, %p991_p4 }
  0x55   : > { %p989_p1 = pneg %p988_p6 }
  0x56   : > { %p995_p10 = por %p994_p9, %p993_p8 }
  0x58   : > { %p996_p11 = pnand %p995_p10, %p989_p1 }
  0x5a   : > { %999 = shalt.err (!%p996_p11)
}
  0x5b   : > { %s1000_s6 = scalar_lea.vmem %s1262_s23, 1024  ;;  %s1079_s13 = smov [#allocation6]  }
  0x5c   : > { %p1001_p13 = scmp.ne.s32.totalorder %s1262_s23, %s1000_s6  ;;  %s1005_s14 = sshll.u32 %s1079_s13, 4  ;;  %s1006_s14 = int_to_ptr.vmem [resolvable:$false] %s1005_s14 }
  0x5d   : > { %s1007_s24 = scalar_lea.vmem %s1006_s14, 2048  ;;  %p1008_p0 = scmp.lt.s32.totalorder %s1262_s23, %s1006_s14 }
  0x5e   : > { %p1003_p2 = pnand %p1001_p13, %p957_p12  ;;  %p1009_p6 = scmp.lt.s32.totalorder %s1007_s24, %s1000_s6 }
  0x60   : > { %p1004_p3 = pneg %p1003_p2  ;;  %p1010_p4 = por %p1009_p6, %p1008_p0 }
  0x62   : > { %p1011_p5 = pnand %p1010_p4, %p1004_p3 }
  0x64   : > { %1014 = shalt.err (!%p1011_p5)
}
  0x65   : > { %s1383_s0 = smov 4   ;;  %s1384_s19 = smov 64  }
  0x66   : > { %847 = dma.hbm_to_vmem [thread:$0]  (!%p1226_p7), %s1268_s21, 1024, %s1262_s23, %s1270_s25, %s1384_s19, %s1384_s19, %s1383_s0  }
  0x67   : > { %p1385_p12 = scmp.ne.s32.totalorder %s1379_s11, 0 }
  0x68   : > { %s309_s18 = sand.u32 (!%p1385_p12), 1, %s1057_s27   ;;  %p1386_p1 = scmp.ne.s32.totalorder (!%p1385_p12), %s1378_s10, 0 }
  0x69   : > { %307 = sbr.rel (%p1385_p12) target bundleno = 781 (0x30d), region = 48  ;;  %s743_s22 = sshll.u32 (!%p1385_p12), %s309_s18, 3 }
  0x6a   : > { %s310_s26 = scalar_lea.sflag (!%p1385_p12), [#allocation5], %s309_s18  ;;  %s1302_s16 = scalar_lea.vmem (!%p1385_p12), [#allocation4], %s743_s22 }
  0x70   : > { %1040 = dma.done.wait (%p1386_p1), %s310_s26, 128  }
  0x71   : > { %1042 = vsyncadd (%p1386_p1), %s310_s26, 4294967168  ;;  %s1387_s12 = sadd.s32 4294967295, %s1073_s8   ;;  %s744_s25 = sshll.u32 %s309_s18, 6 }
  0x72   : > { %s318_s17 = sand.u32 1, %s1387_s12   ;;  %s1310_s11 = scalar_lea.vmem [#allocation6], %s744_s25 }
  0x73   : > { %s319_s23 = scalar_lea.sflag [#allocation7], %s318_s17 }
  0x74   : > { %1044 = dma.done.wait (%p1386_p1), %s319_s23, 1024  }
  0x75   : > { %1046 = vsyncadd (%p1386_p1), %s319_s23, 4294966272  ;;  %p1388_p7 = scmp.ne.s32.totalorder %s1377_s9, 0 }
  0x77   : > { %1048 = dma.done.wait (%p1388_p7), [#allocation7], 1024  }
  0x78   : > { %1050 = vsyncadd (%p1388_p7), [#allocation7], 4294966272  ;;  %p746_p8 = scmp.ne.s32.totalorder %s1065_s29, 0 }
  0x79   : > { %v1080_v0 = vmov (!%p746_p8), 0.0  }
  0x7a   : > { %370 = sbr.rel (%p746_p8) target bundleno = 129 (0x81), region = 64  ;;  %371 = vst [vmem:[#allocation2] sm:$0xff] (!%p746_p8), %v1080_v0 }
  0x81 PF: > { %v907_v1 = vld [vmem:[%s1310_s11] sm:$0xff]   ;;  %v1081_v2 = vmov 0.0   ;;  %v908_v3 = vld [vmem:[%s1310_s11 + $0x8] sm:$0xff]   ;;  %vm1082_vm0 = vmmov 0   ;;  %v909_v4 = vld [vmem:[%s1310_s11 + $0x10] sm:$0xff]   ;;  %p755_p9 = scmp.ne.s32.totalorder %s1065_s29, 1 }
  0x82   : > { %789 = vmatprep.subr.bf16.mxu0 %v1081_v2  ;;  %805 = vmatprep.mubr.msk.bf16.mxu0 %vm1082_vm0, %v1081_v2  ;;  %v910_v5 = vld [vmem:[%s1310_s11 + $0x18] sm:$0xff]   ;;  %v911_v6 = vld [vmem:[%s1310_s11 + $0x20] sm:$0xff]   ;;  %v912_v7 = vld [vmem:[%s1310_s11 + $0x28] sm:$0xff]   ;;  %v1083_v19 = vmov (!%p755_p9), 0.0   ;;  %vm1084_vm1 = vmmov (!%p755_p9), 0   ;;  %s618_s14 = sld [smem:[#allocation3]] (!%p755_p9) }
  0x83   : > { %790 = vmatpush3.bf16.msra.mxu0 %v907_v1  ;;  %v913_v8 = vld [vmem:[%s1310_s11 + $0x30] sm:$0xff]   ;;  %v914_v9 = vld [vmem:[%s1310_s11 + $0x38] sm:$0xff]   ;;  %v372_v12 = vld [vmem:[#allocation2] sm:$0xff]  ;;  %vm627_vm2 = vcmask (!%p755_p9), 7168  }
  0x84   : > { %791 = vmatprep.subr.bf16.mxu0 %v1081_v2  ;;  %v373_v10 = vld [vmem:[%s1302_s16] sm:$0xff]  ;;  %v915_v18 = vld [vmem:[#allocation8] sm:$0xff] (!%p755_p9)   ;;  %v916_v20 = vld [vmem:[#allocation8 + $0x8] sm:$0xff] (!%p755_p9)  }
  0x85   : > { %v374_v11 = vpack.c.bf16 %v373_v10, %v373_v10  ;;  %v917_v21 = vld [vmem:[#allocation8 + $0x10] sm:$0xff] (!%p755_p9)   ;;  %v918_v22 = vld [vmem:[#allocation8 + $0x18] sm:$0xff] (!%p755_p9)   ;;  %v919_v23 = vld [vmem:[#allocation8 + $0x20] sm:$0xff] (!%p755_p9)  }
  0x86   : > { %v920_v24 = vld [vmem:[#allocation8 + $0x28] sm:$0xff] (!%p755_p9)   ;;  %v921_v28 = vld [vmem:[#allocation8 + $0x30] sm:$0xff] (!%p755_p9)   ;;  %v922_v30 = vld [vmem:[#allocation8 + $0x38] sm:$0xff] (!%p755_p9)  }
  0x87   : > { %792 = vmatpush3.bf16.msra.mxu0 %v908_v3  ;;  %v756_v26 = vld [vmem:[%s1363_s2] ss:$0 sm:$0xff] (!%p755_p9) }
  0x88   : > { %793 = vmatprep.subr.bf16.mxu0 %v1081_v2  ;;  %v757_v32 = vld [vmem:[%s1365_s4] ss:$0 sm:$0xff] (!%p755_p9)  ;;  %v619_v41 = vstv (!%p755_p9), %s618_s14 }
  0x89   : > { %v766_v37 = vld [vmem:[%s1366_s5] ss:$0 sm:$0xff] (!%p755_p9) }
  0x8b   : > { %794 = vmatpush3.bf16.msra.mxu0 %v909_v4 }
  0x8c   : > { %795 = vmatprep.subr.bf16.mxu0 %v1081_v2 }
  0x8f   : > { %796 = vmatpush3.bf16.msra.mxu0 %v910_v5 }
  0x90   : > { %797 = vmatprep.subr.bf16.mxu0 %v1081_v2 }
  0x93   : > { %798 = vmatpush3.bf16.msra.mxu0 %v911_v6 }
  0x94   : > { %799 = vmatprep.subr.bf16.mxu0 %v1081_v2 }
  0x97   : > { %800 = vmatpush3.bf16.msra.mxu0 %v912_v7 }
  0x98   : > { %801 = vmatprep.subr.bf16.mxu0 %v1081_v2 }
  0x9b   : > { %802 = vmatpush3.bf16.msra.mxu0 %v913_v8 }
  0x9c   : > { %803 = vmatprep.subr.bf16.mxu0 %v1081_v2 }
  0x9f   : > { %804 = vmatpush3.bf16.msra.mxu0 %v914_v9 }
  0xa0   : > { %809 = vmatprep.subr.bf16.mxu0 (!%p755_p9), %v1083_v19 }
  0xa2   : > { %806 = vmatmul.mubr.bf16.vlgmr.msra.gmra.mrb[0].mxu0 %v374_v11 }
  0xa3   : > { %810 = vmatpush3.bf16.msra.mxu0 (!%p755_p9), %v915_v18  ;;  %825 = vmatprep.mubr.msk.bf16.mxu0 (!%p755_p9), %vm1084_vm1, %v1083_v19 }
  0xa4   : > { %811 = vmatprep.subr.bf16.mxu0 (!%p755_p9), %v1083_v19 }
  0xa7   : > { %812 = vmatpush3.bf16.msra.mxu0 (!%p755_p9), %v916_v20 }
  0xa8   : > { %813 = vmatprep.subr.bf16.mxu0 (!%p755_p9), %v1083_v19 }
  0xab   : > { %814 = vmatpush3.bf16.msra.mxu0 (!%p755_p9), %v917_v21 }
  0xac   : > { %815 = vmatprep.subr.bf16.mxu0 (!%p755_p9), %v1083_v19 }
  0xaf   : > { %816 = vmatpush3.bf16.msra.mxu0 (!%p755_p9), %v918_v22 }
  0xb0   : > { %817 = vmatprep.subr.bf16.mxu0 (!%p755_p9), %v1083_v19 }
  0xb3   : > { %818 = vmatpush3.bf16.msra.mxu0 (!%p755_p9), %v919_v23 }
  0xb4   : > { %819 = vmatprep.subr.bf16.mxu0 (!%p755_p9), %v1083_v19 }
  0xb7   : > { %820 = vmatpush3.bf16.msra.mxu0 (!%p755_p9), %v920_v24 }
  0xb8   : > { %821 = vmatprep.subr.bf16.mxu0 (!%p755_p9), %v1083_v19 }
  0xbb   : > { %822 = vmatpush3.bf16.msra.mxu0 (!%p755_p9), %v921_v28 }
  0xbc   : > { %823 = vmatprep.subr.bf16.mxu0 (!%p755_p9), %v1083_v19 }
  0xbf   : > { %824 = vmatpush3.bf16.msra.mxu0 (!%p755_p9), %v922_v30 }
 0x172   : > { %484 = sbr.rel (%p755_p9) target bundleno = 781 (0x30d), region = 68 }
 0x175   : > { %v473_v13 = vpop.f32.mrb[0].mxu0 }
 0x176   : > { %v479_v14 = vadd.f32 %v473_v13, %v372_v12  ;;  %v807_v15 = vpop.f32.mrb[1].mxu0 }
 0x177   : > { %v476_v16 = vpop.f32.mrb[2].mxu0 }
 0x178   : > { %480 = vst [vmem:[#allocation2] sm:$0xff] %v479_v14  ;;  %v808_v17 = vpop.f32.mrb[3].mxu0 }
 0x17f   : > { %v485_v25 = vld [vmem:[#allocation2] sm:$0xff] }
 0x180   : > { %v493_v27 = vadd.f32 %v756_v26, %v485_v25 }
 0x182   : > { %v494_v29 = vmax.f32 %v493_v27, 0.0 }
 0x184   : > { %v495_v31 = vpack.c.bf16 %v494_v29, %v494_v29 }
 0x186   : > { %826 = vmatmul.mubr.bf16.vlgmr.msra.gmra.mrb[0].mxu0 %v495_v31 }
 0x259   : > { %v601_v33 = vpop.f32.mrb[0].mxu0 }
 0x25a   : > { %v602_v34 = vadd.f32 %v757_v32, %v601_v33  ;;  %v827_v35 = vpop.f32.mrb[1].mxu0 }
 0x25b   : > { %v604_v36 = vpop.f32.mrb[2].mxu0 }
 0x25c   : > { %v607_v38 = vmax.f32 %v602_v34, 0.0  ;;  %v828_v39 = vpop.f32.mrb[3].mxu0 }
 0x25e   : > { %v615_v40 = vmul.f32 %v766_v37, %v607_v38 }
 0x260   : > { %616 = vadd.xlane.f32.xlu0 %v615_v40 }
 0x2ed   : > { %v617_v42 = vpop.xlane.xlu0 %616 }
 0x2ee   : > { %v620_v43 = vadd.f32 %v619_v41, %v617_v42 }
 0x2f0   : > { %v621_v44 = vsub.f32 0.0, %v620_v43 }
 0x2f2   : > { %v622_v45 = vmul.f32 1.442695, %v621_v44 }
 0x2f4   : > { %923 = vpow2.f32 %v622_v45 }
 0x2fe   : > { %v924_v46 = vpop.eup %923 }
 0x2ff   : > { %v624_v47 = vadd.f32 1.0, %v924_v46 }
 0x301   : > { %925 = vrcp.f32 %v624_v47 }
 0x30b   : > { %v926_v48 = vpop.eup %925 }
 0x30c   : > { %628 = vst.msk [vmem:[%s1368_s7] sm:$0xff] %vm627_vm2, %v926_v48 }
 0x30d PF: > { %s24_s8 = sadd.s32 1, %s1073_s8   ;;  %s1389_s26 = smov %s1057_s27 }
 0x30e   : > { %p21_p10 = scmp.ge.s32.totalorder %s24_s8, 4   ;;  %s1390_s27 = smov %s1061_s28 }
 0x30f   : > { %s1391_s28 = smov %s1219_s20  ;;  %s1392_s29 = smov %s1069_s30 }
 0x310   : > { %s1393_s30 = smov %s1395_s15  ;;  %23 = sbr.rel (!%p21_p10) target bundleno = 9 (0x9), region = 113 }
 0x317   :  { %648 = vsyncpa [#allocation5], 1 }
 0x318   :  { %650 = vsyncpa [#allocation5 + $0x1], 1 }
 0x319   :  { %651 = vsyncpa [#allocation7], 1 }
 0x31a   :  { %653 = vsyncpa [#allocation7 + $0x1], 1 }

</bundles_post_ra>
